<compile_context>
chip_gen: v5e
topology: v5e:2x2
jax: 0.10.0
libtpu: 0.0.40
codegen_flags: <defaults>
</compile_context>

<pallas_src>
import numpy as np
import jax
import jax.numpy as jnp
from jax.experimental import pallas as pl
from jax.experimental.pallas import tpu as pltpu


# ---------------------------------------------------------------------------
# Pallas kernel: banded matmul with the weight block built in-kernel (P1+P2+P3)
# ---------------------------------------------------------------------------
def _resample_kernel(kstart_ref, x_ref, lo_ref, hi_ref, wlo_ref, whi_ref,
                     o_ref, acc_ref):
    # kstart_ref (scalar prefetch, SMEM) is only consumed by the index_maps.
    del kstart_ref
    k = pl.program_id(2)
    tk = x_ref.shape[1]
    tn = lo_ref.shape[1]

    @pl.when(k == 0)
    def _():
        acc_ref[...] = jnp.zeros_like(acc_ref)

    # Build the (tk, tn) interpolation-weight block on the fly (VPU) instead of
    # streaming a huge precomputed banded W from HBM.  Each output column has
    # exactly two non-zeros: w_lo at its band-local lo index and w_hi at hi.
    row = jax.lax.broadcasted_iota(jnp.int32, (tk, tn), 0) + k * tk
    w = (jnp.where(row == lo_ref[...], wlo_ref[...], jnp.float32(0.0)) +
         jnp.where(row == hi_ref[...], whi_ref[...], jnp.float32(0.0)))

    acc_ref[...] += jnp.dot(x_ref[...], w, preferred_element_type=jnp.float32)

    @pl.when(k == pl.num_programs(2) - 1)
    def _():
        o_ref[...] = acc_ref[...].astype(o_ref.dtype)


def _banded_interp_matmul(kstart, x, lo2, hi2, wlo2, whi2, *, tm, tn, tk, kb):
    """x: (Mp, Kp) f32; lo2/hi2: (1, Np) i32; wlo2/whi2: (1, Np) f32."""
    Mp, Kp = x.shape
    Np = lo2.shape[1]
    assert Mp % tm == 0 and Kp % tk == 0 and Np % tn == 0
    n_tiles = Np // tn

    return pl.pallas_call(
        _resample_kernel,
        out_shape=jax.ShapeDtypeStruct((Mp, Np), jnp.float32),
        grid_spec=pltpu.PrefetchScalarGridSpec(
            num_scalar_prefetch=1,
            grid=(Mp // tm, n_tiles, kb),
            in_specs=[
                # lhs: K block = band start of output tile j, plus local step k.
                pl.BlockSpec((tm, tk), lambda i, j, k, ks: (i, ks[j] + k)),
                # per-output band-local lo/hi indices and the two weights.
                pl.BlockSpec((1, tn), lambda i, j, k, ks: (0, j)),
                pl.BlockSpec((1, tn), lambda i, j, k, ks: (0, j)),
                pl.BlockSpec((1, tn), lambda i, j, k, ks: (0, j)),
                pl.BlockSpec((1, tn), lambda i, j, k, ks: (0, j)),
            ],
            out_specs=pl.BlockSpec((tm, tn), lambda i, j, k, ks: (i, j)),
            scratch_shapes=[pltpu.VMEM((tm, tn), jnp.float32)],
        ),
        compiler_params=pltpu.CompilerParams(
            dimension_semantics=("parallel", "parallel", "arbitrary"),
        ),
    )(kstart, x, lo2, hi2, wlo2, whi2)


# ---------------------------------------------------------------------------
# Wrapper reproducing ChangeSampleRate.forward semantics
# ---------------------------------------------------------------------------
def _round_up(x: int, m: int) -> int:
    return (x + m - 1) // m * m


def change_sample_rate(wav, input_rate: int, output_rate: int):
    """wav: (B, ...) -> (B, new_length) float32, linear-interp resample.

    Matches the PyTorch module: channels are flattened into the time axis
    (wav.view(B, -1)), so interpolation crosses channel boundaries for C > 1.
    """
    B = int(wav.shape[0])
    wav2 = jnp.asarray(wav).reshape(B, -1).astype(jnp.float32)
    T = int(wav2.shape[-1])
    new_length = T * output_rate // input_rate

    # --- static index / weight construction (mimics torch float32 math) ----
    ratio = np.float32(input_rate / output_rate)
    pos = np.arange(new_length, dtype=np.float32) * ratio          # float32
    lo = pos.astype(np.int64)                                      # .long() == trunc
    hi = np.minimum(lo + 1, T - 1)                                 # .clamp(max=T-1)
    frac = np.fmod(pos, np.float32(1.0)).astype(np.float32)
    w_lo = (np.float32(1.0) - frac).astype(np.float32)
    w_hi = frac

    # --- tile sizes ----------------------------------------------------------
    tm = 8                                    # M (= batch) is tiny; min sublane tile
    tn = min(512, _round_up(max(new_length, 1), 128))
    tk = min(512, _round_up(T, 128))

    Mp = _round_up(B, tm)
    Np = _round_up(max(new_length, 1), tn)
    Kp = _round_up(T, tk)
    n_tiles = Np // tn
    k_blocks = Kp // tk

    # --- per-output-tile band: k_start block + common band depth kb ---------
    if new_length > 0:
        c0 = np.arange(n_tiles, dtype=np.int64) * tn
        c1 = np.minimum(c0 + tn, new_length)
        valid = c1 > c0
        lo_min = np.where(valid, lo[np.minimum(c0, new_length - 1)], 0)
        hi_max = np.where(valid, hi[np.maximum(c1 - 1, 0)], 0)
        kstart_blk = np.where(valid, lo_min // tk, 0)
        spans = np.where(valid, hi_max // tk - kstart_blk + 1, 1)
        kb = int(max(1, spans.max()))
    else:
        kstart_blk = np.zeros(n_tiles, dtype=np.int64)
        kb = 1
    kb = min(kb, k_blocks)
    # Clamp band starts so k_start + kb stays inside the padded input; the
    # clamped band still covers [lo_min, hi_max] (it ends at Kp-1 >= T-1).
    kstart_blk = np.minimum(kstart_blk, k_blocks - kb).astype(np.int32)

    # --- per-output band-local indices + weights (16 bytes / output) --------
    lo_rel = np.full(Np, -1, dtype=np.int32)      # -1 never matches -> zero col
    hi_rel = np.full(Np, -1, dtype=np.int32)
    wlo_p = np.zeros(Np, dtype=np.float32)
    whi_p = np.zeros(Np, dtype=np.float32)
    if new_length > 0:
        tile_id = np.arange(new_length, dtype=np.int64) // tn
        base = kstart_blk.astype(np.int64)[tile_id] * tk
        lo_rel[:new_length] = (lo - base).astype(np.int32)
        hi_rel[:new_length] = (hi - base).astype(np.int32)
        wlo_p[:new_length] = w_lo
        whi_p[:new_length] = w_hi

    # --- pad input on device and run the banded Pallas matmul ---------------
    x_pad = jnp.pad(wav2, ((0, Mp - B), (0, Kp - T)))
    out_pad = _banded_interp_matmul(
        jnp.asarray(kstart_blk),
        x_pad,
        jnp.asarray(lo_rel).reshape(1, Np),
        jnp.asarray(hi_rel).reshape(1, Np),
        jnp.asarray(wlo_p).reshape(1, Np),
        jnp.asarray(whi_p).reshape(1, Np),
        tm=tm, tn=tn, tk=tk, kb=kb,
    )
    return out_pad[:B, :new_length]


# ---------------------------------------------------------------------------
# Pure-JAX reference (mirrors the PyTorch forward) for a sanity check
# ---------------------------------------------------------------------------
def change_sample_rate_ref(wav, input_rate: int, output_rate: int):
    B = wav.shape[0]
    wav2 = wav.reshape(B, -1).astype(jnp.float32)
    T = wav2.shape[-1]
    new_length = T * output_rate // input_rate
    pos = jnp.arange(new_length, dtype=jnp.float32) * jnp.float32(
        input_rate / output_rate
    )
    lo = pos.astype(jnp.int32)
    hi = jnp.minimum(lo + 1, T - 1)
    frac = jnp.fmod(pos, 1.0)
    down = wav2[:, lo]
    up = wav2[:, hi]
    return down * (1.0 - frac)[None, :] + up * frac[None, :]


if __name__ == "__main__":
    key = jax.random.PRNGKey(0)
    k1, k2, k3 = jax.random.split(key, 3)

    cases = [
        # Small single-channel case (single tile along every dim), downsample.
        (jax.random.normal(k1, (2, 1, 240), dtype=jnp.float32), 22050, 16000),
        # Multi-channel case exercising several N tiles and band-skipped K steps.
        (jax.random.normal(k2, (2, 3, 700), dtype=jnp.float32), 22050, 16000),
        # Upsampling (ratio < 1) case.
        (jax.random.normal(k3, (2, 3, 700), dtype=jnp.float32), 16000, 22050),
    ]

    for wav, in_rate, out_rate in cases:
        out = jax.block_until_ready(change_sample_rate(wav, in_rate, out_rate))
        ref = jax.block_until_ready(change_sample_rate_ref(wav, in_rate, out_rate))
        assert out.shape == ref.shape, (out.shape, ref.shape)
        assert np.allclose(np.asarray(out), np.asarray(ref), atol=1e-4, rtol=1e-4)

    print("KERNEL_OK")
</pallas_src>

<mosaic_0001>
module attributes {stable_mosaic.version = 11 : i64} {
  func.func @_resample_kernel(%arg0: i32, %arg1: i32, %arg2: i32, %arg3: memref<1xi32, #tpu.memory_space<smem>>, %arg4: memref<8x256xf32, #tpu.memory_space<vmem>>, %arg5: memref<1x256xi32, #tpu.memory_space<vmem>>, %arg6: memref<1x256xi32, #tpu.memory_space<vmem>>, %arg7: memref<1x256xf32, #tpu.memory_space<vmem>>, %arg8: memref<1x256xf32, #tpu.memory_space<vmem>>, %arg9: memref<8x256xf32, #tpu.memory_space<vmem>>, %arg10: memref<8x256xf32, #tpu.memory_space<vmem>>) attributes {dimension_semantics = [#tpu.dimension_semantics<parallel>, #tpu.dimension_semantics<parallel>, #tpu.dimension_semantics<arbitrary>], iteration_bounds = array<i64: 1, 1, 1>, scalar_prefetch = 1 : i64, scratch_operands = 1 : i64, tpu.core_type = #tpu.core_type<tc>, window_params = [{transform_indices = @transform_0, window_bounds = array<i64: 8, 256>}, {transform_indices = @transform_1, window_bounds = array<i64: 1, 256>}, {transform_indices = @transform_2, window_bounds = array<i64: 1, 256>}, {transform_indices = @transform_3, window_bounds = array<i64: 1, 256>}, {transform_indices = @transform_4, window_bounds = array<i64: 1, 256>}, {transform_indices = @transform_5, window_bounds = array<i64: 8, 256>}]} {
    %c0_i32 = arith.constant 0 : i32
    %0 = arith.cmpi eq, %arg2, %c0_i32 : i32
    %1 = arith.extui %0 : i1 to i32
    %c0_i32_0 = arith.constant 0 : i32
    %2 = arith.cmpi ne, %1, %c0_i32_0 : i32
    scf.if %2 {
      %cst_18 = arith.constant 0.000000e+00 : f32
      %32 = vector.broadcast %cst_18 : f32 to vector<8x256xf32>
      %c0_19 = arith.constant 0 : index
      %c0_20 = arith.constant 0 : index
      %33 = vector.load %arg10[%c0_19, %c0_20] : memref<8x256xf32, #tpu.memory_space<vmem>>, vector<8x256xf32>
      tpu.vector_store %arg10[%c0_19, %c0_20], %32 {strides = array<i32>} : memref<8x256xf32, #tpu.memory_space<vmem>>, vector<8x256xf32>,
    } else {
    }
    %3 = tpu.iota {dimensions = array<i32: 0>} : vector<256x256xi32>
    %c256_i32 = arith.constant 256 : i32
    %4 = arith.muli %arg2, %c256_i32 : i32
    %5 = vector.broadcast %4 : i32 to vector<256x256xi32>
    %6 = arith.addi %3, %5 : vector<256x256xi32>
    %c0 = arith.constant 0 : index
    %c0_1 = arith.constant 0 : index
    %7 = vector.load %arg5[%c0, %c0_1] : memref<1x256xi32, #tpu.memory_space<vmem>>, vector<1x256xi32>
    %8 = vector.broadcast %7 : vector<1x256xi32> to vector<256x256xi32>
    %9 = arith.cmpi eq, %6, %8 : vector<256x256xi32>
    %c0_2 = arith.constant 0 : index
    %c0_3 = arith.constant 0 : index
    %10 = vector.load %arg7[%c0_2, %c0_3] : memref<1x256xf32, #tpu.memory_space<vmem>>, vector<1x256xf32>
    %cst = arith.constant 0.000000e+00 : f32
    %11 = vector.shape_cast %10 : vector<1x256xf32> to vector<1x256xf32>
    %12 = vector.broadcast %11 : vector<1x256xf32> to vector<256x256xf32>
    %13 = vector.broadcast %cst : f32 to vector<256x256xf32>
    %14 = arith.select %9, %12, %13 : vector<256x256xi1>, vector<256x256xf32>
    %c0_4 = arith.constant 0 : index
    %c0_5 = arith.constant 0 : index
    %15 = vector.load %arg6[%c0_4, %c0_5] : memref<1x256xi32, #tpu.memory_space<vmem>>, vector<1x256xi32>
    %16 = vector.broadcast %15 : vector<1x256xi32> to vector<256x256xi32>
    %17 = arith.cmpi eq, %6, %16 : vector<256x256xi32>
    %c0_6 = arith.constant 0 : index
    %c0_7 = arith.constant 0 : index
    %18 = vector.load %arg8[%c0_6, %c0_7] : memref<1x256xf32, #tpu.memory_space<vmem>>, vector<1x256xf32>
    %cst_8 = arith.constant 0.000000e+00 : f32
    %19 = vector.shape_cast %18 : vector<1x256xf32> to vector<1x256xf32>
    %20 = vector.broadcast %19 : vector<1x256xf32> to vector<256x256xf32>
    %21 = vector.broadcast %cst_8 : f32 to vector<256x256xf32>
    %22 = arith.select %17, %20, %21 : vector<256x256xi1>, vector<256x256xf32>
    %23 = arith.addf %14, %22 : vector<256x256xf32>
    %c0_9 = arith.constant 0 : index
    %c0_10 = arith.constant 0 : index
    %24 = vector.load %arg10[%c0_9, %c0_10] : memref<8x256xf32, #tpu.memory_space<vmem>>, vector<8x256xf32>
    %c0_11 = arith.constant 0 : index
    %c0_12 = arith.constant 0 : index
    %25 = vector.load %arg4[%c0_11, %c0_12] : memref<8x256xf32, #tpu.memory_space<vmem>>, vector<8x256xf32>
    %cst_13 = arith.constant dense<0.000000e+00> : vector<8x256xf32>
    %26 = tpu.matmul %25, %23, %cst_13 {dimension_numbers = #tpu.dot_dimension_numbers<[1], [0], [0], [1], [0, 0, 1, 1], [], []>} : vector<8x256xf32>, vector<256x256xf32>, vector<8x256xf32> -> vector<8x256xf32>
    %27 = arith.addf %24, %26 : vector<8x256xf32>
    %c0_14 = arith.constant 0 : index
    %c0_15 = arith.constant 0 : index
    %28 = vector.load %arg10[%c0_14, %c0_15] : memref<8x256xf32, #tpu.memory_space<vmem>>, vector<8x256xf32>
    tpu.vector_store %arg10[%c0_14, %c0_15], %27 {strides = array<i32>} : memref<8x256xf32, #tpu.memory_space<vmem>>, vector<8x256xf32>,
    %c0_i32_16 = arith.constant 0 : i32
    %29 = arith.cmpi eq, %arg2, %c0_i32_16 : i32
    %30 = arith.extui %29 : i1 to i32
    %c0_i32_17 = arith.constant 0 : i32
    %31 = arith.cmpi ne, %30, %c0_i32_17 : i32
    scf.if %31 {
      %c0_18 = arith.constant 0 : index
      %c0_19 = arith.constant 0 : index
      %32 = vector.load %arg10[%c0_18, %c0_19] : memref<8x256xf32, #tpu.memory_space<vmem>>, vector<8x256xf32>
      %c0_20 = arith.constant 0 : index
      %c0_21 = arith.constant 0 : index
      %33 = vector.load %arg9[%c0_20, %c0_21] : memref<8x256xf32, #tpu.memory_space<vmem>>, vector<8x256xf32>
      tpu.vector_store %arg9[%c0_20, %c0_21], %32 {strides = array<i32>} : memref<8x256xf32, #tpu.memory_space<vmem>>, vector<8x256xf32>,
    } else {
    }
    return
  }
  func.func @transform_0(%arg0: i32, %arg1: i32, %arg2: i32, %arg3: memref<1xi32, #tpu.memory_space<smem>>) -> (i32, i32) {
    %0 = arith.index_cast %arg1 : i32 to index
    %1 = memref.load %arg3[%0] : memref<1xi32, #tpu.memory_space<smem>>
    %2 = arith.addi %1, %arg2 : i32
    %c0_i32 = arith.constant 0 : i32
    return %arg0, %2 : i32, i32
  }
  func.func @transform_1(%arg0: i32, %arg1: i32, %arg2: i32, %arg3: memref<1xi32, #tpu.memory_space<smem>>) -> (i32, i32) {
    %c0_i32 = arith.constant 0 : i32
    %c0_i32_0 = arith.constant 0 : i32
    return %c0_i32, %arg1 : i32, i32
  }
  func.func @transform_2(%arg0: i32, %arg1: i32, %arg2: i32, %arg3: memref<1xi32, #tpu.memory_space<smem>>) -> (i32, i32) {
    %c0_i32 = arith.constant 0 : i32
    %c0_i32_0 = arith.constant 0 : i32
    return %c0_i32, %arg1 : i32, i32
  }
  func.func @transform_3(%arg0: i32, %arg1: i32, %arg2: i32, %arg3: memref<1xi32, #tpu.memory_space<smem>>) -> (i32, i32) {
    %c0_i32 = arith.constant 0 : i32
    %c0_i32_0 = arith.constant 0 : i32
    return %c0_i32, %arg1 : i32, i32
  }
  func.func @transform_4(%arg0: i32, %arg1: i32, %arg2: i32, %arg3: memref<1xi32, #tpu.memory_space<smem>>) -> (i32, i32) {
    %c0_i32 = arith.constant 0 : i32
    %c0_i32_0 = arith.constant 0 : i32
    return %c0_i32, %arg1 : i32, i32
  }
  func.func @transform_5(%arg0: i32, %arg1: i32, %arg2: i32, %arg3: memref<1xi32, #tpu.memory_space<smem>>) -> (i32, i32) {
    %c0_i32 = arith.constant 0 : i32
    return %arg0, %arg1 : i32, i32
  }
}

</mosaic_0001>

<bundles_post_ra>
// kernel: tpu_custom_call.1
= control target key start
LH: loop header
LB: loop body
LE: loop exit
PB: predicated region body
PF: predicated region fallthrough
CT: control target
= control target key end

     0   :  { %12 = vsyncpa [#allocation6], 0  ;;  %s1271_s0 = inlined_call_operand.<no memory space> [shape: s32[1], index: 0, kind: input, shape index: {}]   ;;  %s1272_s1 = inlined_call_operand.hbm [shape: f32[8,256], index: 1, kind: input, shape index: {}]   ;;  %s1273_s2 = inlined_call_operand.vmem [shape: s32[1,256], index: 2, kind: input, shape index: {}]   ;;  %s1274_s3 = inlined_call_operand.hbm [shape: s32[1,256], index: 3, kind: input, shape index: {}]   ;;  %s1275_s4 = inlined_call_operand.vmem [shape: f32[1,256], index: 4, kind: input, shape index: {}]   ;;  %s1276_s5 = inlined_call_operand.hbm [shape: f32[1,256], index: 5, kind: input, shape index: {}]   ;;  %s1277_s6 = inlined_call_operand.hbm [shape: f32[8,256], index: 6, kind: output, shape index: {}]  }
   0x1   :  { %13 = vsyncpa [#allocation9], 0  ;;  %s38_s23 = sshll.u32 %s1274_s3, 4  ;;  %s39_s23 = int_to_ptr.hbm [resolvable:$true] %s38_s23 }
   0x2   :  { %14 = vsyncpa [#allocation7], 0  ;;  %s707_s24 = smov [#allocation8]   ;;  %s600_s28 = sshll.u32 %s1271_s0, 4 }
   0x3   :  { %s40_s25 = sshll.u32 %s707_s24, 4  ;;  %s23_s7 = scalar_lea.hbm %s1272_s1, %s600_s28  ;;  %s41_s25 = int_to_ptr.vmem [resolvable:$true] %s40_s25 }
   0x4   :  { %43 = dma.hbm_to_vmem [thread:$0]  %s39_s23, 32, %s41_s25, [#allocation9]  }
   0x5   :  { %s25_s8 = sshll.u32 %s23_s7, 4  ;;  %s708_s9 = smov [#allocation5]   ;;  %s26_s8 = int_to_ptr.hbm [resolvable:$true] %s25_s8 }
   0x6   :  { %s27_s10 = sshll.u32 %s708_s9, 4  ;;  %s629_s3 = sshra.s32 %s26_s8, 4  ;;  %s28_s10 = int_to_ptr.vmem [resolvable:$true] %s27_s10  ;;  %s630_s3 = int_to_ptr.hbm [resolvable:$true] %s629_s3 }
   0x7   :  { %s631_s11 = scalar_lea.hbm %s630_s3, 16  ;;  %s633_s14 = scalar_lea.hbm %s1272_s1, 16 }
   0x8   :  { %p632_p0 = scmp.ne.s32.totalorder %s630_s3, %s631_s11  ;;  %p634_p1 = scmp.lt.s32.totalorder %s630_s3, %s1272_s1 }
   0x9   :  { %p635_p2 = scmp.lt.s32.totalorder %s633_s14, %s631_s11 }
   0xb   :  { %p636_p3 = por %p635_p2, %p634_p1 }
   0xd   :  { %p637_p4 = pnand %p636_p3, %p632_p0 }
   0xf   :  { %640 = shalt.err (!%p637_p4)
}
  0x10   :  { %30 = dma.hbm_to_vmem [thread:$0]  %s26_s8, 256, %s28_s10, [#allocation6]  }
  0x11   :  { %s51_s18 = sshll.u32 %s1276_s5, 4  ;;  %s709_s19 = smov [#allocation10]   ;;  %s52_s18 = int_to_ptr.hbm [resolvable:$true] %s51_s18 }
  0x12   :  { %s53_s20 = sshll.u32 %s709_s19, 4  ;;  %s54_s20 = int_to_ptr.vmem [resolvable:$true] %s53_s20 }
  0x13   :  { %56 = dma.hbm_to_vmem [thread:$0]  %s52_s18, 32, %s54_s20, [#allocation9]  }
  0x14   :  { %701 = dma.done.wait [#allocation6], 256  }
  0x15   :  { %702 = vsyncadd [#allocation6], 4294967040 }
  0x16   :  { %703 = dma.done.wait [#allocation9], 64  }
  0x17   :  { %704 = vsyncadd [#allocation9], 4294967232  ;;  %v78_v0 = vlaneseq  ;;  %v145_v14 = vld [vmem:[%s1273_s2] sm:$0x3]  ;;  %v282_v16 = vld [vmem:[#allocation8] sm:$0x3] }
  0x18   :  { %v212_v15 = vld [vmem:[%s1275_s4] sm:$0x3]  ;;  %v808_v17 = vperm.slane %v145_v14, 0  ;;  %v810_v18 = vperm.slane %v145_v14, 1  ;;  %v349_v21 = vld [vmem:[#allocation10] sm:$0x3] }
  0x19   :  { %v764_v1 = vshrl.u32 %v78_v0, 7  ;;  %v812_v19 = vperm.slane %v212_v15, 0  ;;  %v814_v20 = vperm.slane %v212_v15, 1  ;;  %v816_v22 = vperm.slane %v282_v16, 0  ;;  %s710_s2 = smov [#allocation11]   ;;  %s585_s25 = sshll.u32 %s1277_s6, 4  ;;  %s586_s25 = int_to_ptr.hbm [resolvable:$true] %s585_s25 }
  0x1a   :  { %v818_v23 = vperm.slane %v282_v16, 1  ;;  %v820_v24 = vperm.slane %v349_v21, 0  ;;  %v822_v25 = vperm.slane %v349_v21, 1  ;;  %s583_s4 = sshll.u32 %s710_s2, 4  ;;  %s584_s4 = int_to_ptr.vmem [resolvable:$true] %s583_s4 }
  0x1b   :  { %v767_v2 = vadd.s32 120, %v764_v1  ;;  %v770_v3 = vadd.s32 248, %v764_v1  ;;  %v773_v4 = vadd.s32 112, %v764_v1  ;;  %v776_v5 = vadd.s32 240, %v764_v1 }
  0x1c   :  { %v779_v6 = vadd.s32 104, %v764_v1  ;;  %v782_v7 = vadd.s32 232, %v764_v1  ;;  %v785_v8 = vadd.s32 96, %v764_v1  ;;  %v788_v9 = vadd.s32 224, %v764_v1 }
  0x1d   :  { %v791_v10 = vadd.s32 88, %v764_v1  ;;  %v794_v11 = vadd.s32 216, %v764_v1  ;;  %v797_v12 = vadd.s32 80, %v764_v1  ;;  %v800_v13 = vadd.s32 208, %v764_v1 }
  0x1e   :  { %vm179_vm0 = vcmp.eq.s32.totalorder %v767_v2, %v810_v18  ;;  %vm211_vm1 = vcmp.eq.s32.totalorder %v770_v3, %v810_v18  ;;  %vm177_vm2 = vcmp.eq.s32.totalorder %v773_v4, %v810_v18  ;;  %vm209_vm3 = vcmp.eq.s32.totalorder %v776_v5, %v810_v18 }
  0x1f   :  { %v249_v26 = vsel %vm179_vm0, %v814_v20, 0.0  ;;  %vm316_vm4 = vcmp.eq.s32.totalorder %v767_v2, %v818_v23  ;;  %v281_v27 = vsel %vm211_vm1, %v814_v20, 0.0  ;;  %vm348_vm5 = vcmp.eq.s32.totalorder %v770_v3, %v818_v23 }
  0x20   :  { %v386_v28 = vsel %vm316_vm4, %v822_v25, 0.0  ;;  %v418_v29 = vsel %vm348_vm5, %v822_v25, 0.0  ;;  %v247_v30 = vsel %vm177_vm2, %v814_v20, 0.0  ;;  %vm314_vm6 = vcmp.eq.s32.totalorder %v773_v4, %v818_v23 }
  0x21   :  { %v450_v31 = vadd.f32 %v386_v28, %v249_v26  ;;  %v482_v32 = vadd.f32 %v418_v29, %v281_v27  ;;  %v384_v33 = vsel %vm314_vm6, %v822_v25, 0.0  ;;  %v279_v34 = vsel %vm209_vm3, %v814_v20, 0.0 }
  0x22   :  { %v448_v35 = vadd.f32 %v384_v33, %v247_v30  ;;  %vm346_vm7 = vcmp.eq.s32.totalorder %v776_v5, %v818_v23  ;;  %vm175_vm8 = vcmp.eq.s32.totalorder %v779_v6, %v810_v18  ;;  %vm312_vm9 = vcmp.eq.s32.totalorder %v779_v6, %v818_v23 }
  0x23   :  { %527 = vmatpush.msra.mxu2 %v450_v31  ;;  %547 = vmatpush.msra.mxu3 %v482_v32  ;;  %v416_v36 = vsel %vm346_vm7, %v822_v25, 0.0  ;;  %v245_v37 = vsel %vm175_vm8, %v814_v20, 0.0  ;;  %v382_v38 = vsel %vm312_vm9, %v822_v25, 0.0  ;;  %vm207_vm10 = vcmp.eq.s32.totalorder %v782_v7, %v810_v18 }
  0x24   :  { %v480_v39 = vadd.f32 %v416_v36, %v279_v34  ;;  %v446_v40 = vadd.f32 %v382_v38, %v245_v37  ;;  %v277_v41 = vsel %vm207_vm10, %v814_v20, 0.0  ;;  %vm344_vm11 = vcmp.eq.s32.totalorder %v782_v7, %v818_v23 }
  0x25   :  { %528 = vmatpush.msra.mxu2 %v448_v35  ;;  %v414_v42 = vsel %vm344_vm11, %v822_v25, 0.0  ;;  %vm178_vm12 = vcmp.eq.s32.totalorder %v767_v2, %v808_v17  ;;  %vm315_vm13 = vcmp.eq.s32.totalorder %v767_v2, %v816_v22  ;;  %vm210_vm14 = vcmp.eq.s32.totalorder %v770_v3, %v808_v17 }
  0x26   :  { %548 = vmatpush.msra.mxu3 %v480_v39  ;;  %v478_v43 = vadd.f32 %v414_v42, %v277_v41  ;;  %v248_v44 = vsel %vm178_vm12, %v812_v19, 0.0  ;;  %v385_v45 = vsel %vm315_vm13, %v820_v24, 0.0  ;;  %v280_v46 = vsel %vm210_vm14, %v812_v19, 0.0 }
  0x27   :  { %529 = vmatpush.msra.mxu2 %v446_v40  ;;  %v449_v47 = vadd.f32 %v385_v45, %v248_v44  ;;  %vm347_vm15 = vcmp.eq.s32.totalorder %v770_v3, %v816_v22  ;;  %vm173_vm0 = vcmp.eq.s32.totalorder %v785_v8, %v810_v18  ;;  %vm310_vm1 = vcmp.eq.s32.totalorder %v785_v8, %v818_v23 }
  0x28   :  { %549 = vmatpush.msra.mxu3 %v478_v43  ;;  %v417_v48 = vsel %vm347_vm15, %v820_v24, 0.0  ;;  %v243_v49 = vsel %vm173_vm0, %v814_v20, 0.0  ;;  %v380_v50 = vsel %vm310_vm1, %v822_v25, 0.0  ;;  %vm205_vm2 = vcmp.eq.s32.totalorder %v788_v9, %v810_v18 }
  0x29   :  { %487 = vmatpush.msra.mxu0 %v449_v47  ;;  %v481_v51 = vadd.f32 %v417_v48, %v280_v46  ;;  %v444_v52 = vadd.f32 %v380_v50, %v243_v49  ;;  %v275_v53 = vsel %vm205_vm2, %v814_v20, 0.0  ;;  %vm342_vm3 = vcmp.eq.s32.totalorder %v788_v9, %v818_v23 }
  0x2a   :  { %v412_v54 = vsel %vm342_vm3, %v822_v25, 0.0  ;;  %vm176_vm4 = vcmp.eq.s32.totalorder %v773_v4, %v808_v17  ;;  %vm313_vm5 = vcmp.eq.s32.totalorder %v773_v4, %v816_v22  ;;  %vm208_vm6 = vcmp.eq.s32.totalorder %v776_v5, %v808_v17 }
  0x2b   :  { %507 = vmatpush.msra.mxu1 %v481_v51  ;;  %530 = vmatpush.msra.mxu2 %v444_v52  ;;  %v476_v55 = vadd.f32 %v412_v54, %v275_v53  ;;  %v246_v56 = vsel %vm176_vm4, %v812_v19, 0.0  ;;  %v383_v57 = vsel %vm313_vm5, %v820_v24, 0.0  ;;  %v278_v58 = vsel %vm208_vm6, %v812_v19, 0.0 }
  0x2c   :  { %v447_v59 = vadd.f32 %v383_v57, %v246_v56  ;;  %vm345_vm7 = vcmp.eq.s32.totalorder %v776_v5, %v816_v22  ;;  %vm171_vm8 = vcmp.eq.s32.totalorder %v791_v10, %v810_v18  ;;  %vm308_vm9 = vcmp.eq.s32.totalorder %v791_v10, %v818_v23 }
  0x2d   :  { %550 = vmatpush.msra.mxu3 %v476_v55  ;;  %v415_v60 = vsel %vm345_vm7, %v820_v24, 0.0  ;;  %v241_v61 = vsel %vm171_vm8, %v814_v20, 0.0  ;;  %v378_v62 = vsel %vm308_vm9, %v822_v25, 0.0  ;;  %vm203_vm10 = vcmp.eq.s32.totalorder %v794_v11, %v810_v18 }
  0x2e   :  { %488 = vmatpush.msra.mxu0 %v447_v59  ;;  %v479_v63 = vadd.f32 %v415_v60, %v278_v58  ;;  %v442_v0 = vadd.f32 %v378_v62, %v241_v61  ;;  %v273_v2 = vsel %vm203_vm10, %v814_v20, 0.0  ;;  %vm340_vm11 = vcmp.eq.s32.totalorder %v794_v11, %v818_v23 }
  0x2f   :  { %v410_v3 = vsel %vm340_vm11, %v822_v25, 0.0  ;;  %vm174_vm12 = vcmp.eq.s32.totalorder %v779_v6, %v808_v17  ;;  %vm311_vm13 = vcmp.eq.s32.totalorder %v779_v6, %v816_v22  ;;  %vm206_vm14 = vcmp.eq.s32.totalorder %v782_v7, %v808_v17 }
  0x30   :  { %508 = vmatpush.msra.mxu1 %v479_v63  ;;  %531 = vmatpush.msra.mxu2 %v442_v0  ;;  %v474_v4 = vadd.f32 %v410_v3, %v273_v2  ;;  %v244_v5 = vsel %vm174_vm12, %v812_v19, 0.0  ;;  %v381_v14 = vsel %vm311_vm13, %v820_v24, 0.0  ;;  %v276_v15 = vsel %vm206_vm14, %v812_v19, 0.0 }
  0x31   :  { %v445_v16 = vadd.f32 %v381_v14, %v244_v5  ;;  %vm343_vm15 = vcmp.eq.s32.totalorder %v782_v7, %v816_v22  ;;  %vm169_vm0 = vcmp.eq.s32.totalorder %v797_v12, %v810_v18  ;;  %vm306_vm1 = vcmp.eq.s32.totalorder %v797_v12, %v818_v23 }
  0x32   :  { %551 = vmatpush.msra.mxu3 %v474_v4  ;;  %v413_v6 = vsel %vm343_vm15, %v820_v24, 0.0  ;;  %v239_v21 = vsel %vm169_vm0, %v814_v20, 0.0  ;;  %v376_v26 = vsel %vm306_vm1, %v822_v25, 0.0  ;;  %vm201_vm2 = vcmp.eq.s32.totalorder %v800_v13, %v810_v18 }
  0x33   :  { %489 = vmatpush.msra.mxu0 %v445_v16  ;;  %v477_v27 = vadd.f32 %v413_v6, %v276_v15  ;;  %v440_v28 = vadd.f32 %v376_v26, %v239_v21  ;;  %v271_v7 = vsel %vm201_vm2, %v814_v20, 0.0  ;;  %vm338_vm3 = vcmp.eq.s32.totalorder %v800_v13, %v818_v23 }
  0x34   :  { %v408_v29 = vsel %vm338_vm3, %v822_v25, 0.0  ;;  %vm172_vm4 = vcmp.eq.s32.totalorder %v785_v8, %v808_v17  ;;  %vm309_vm5 = vcmp.eq.s32.totalorder %v785_v8, %v816_v22  ;;  %vm204_vm6 = vcmp.eq.s32.totalorder %v788_v9, %v808_v17 }
  0x35   :  { %509 = vmatpush.msra.mxu1 %v477_v27  ;;  %532 = vmatpush.msra.mxu2 %v440_v28  ;;  %v472_v30 = vadd.f32 %v408_v29, %v271_v7  ;;  %v242_v31 = vsel %vm172_vm4, %v812_v19, 0.0  ;;  %v379_v32 = vsel %vm309_vm5, %v820_v24, 0.0  ;;  %v274_v33 = vsel %vm204_vm6, %v812_v19, 0.0 }
  0x36   :  { %v443_v34 = vadd.f32 %v379_v32, %v242_v31  ;;  %vm341_vm7 = vcmp.eq.s32.totalorder %v788_v9, %v816_v22  ;;  %v944_v35 = vadd.s32 72, %v764_v1  ;;  %v947_v8 = vadd.s32 200, %v764_v1 }
  0x37   :  { %552 = vmatpush.msra.mxu3 %v472_v30  ;;  %v411_v36 = vsel %vm341_vm7, %v820_v24, 0.0  ;;  %vm170_vm8 = vcmp.eq.s32.totalorder %v791_v10, %v808_v17  ;;  %vm307_vm9 = vcmp.eq.s32.totalorder %v791_v10, %v816_v22  ;;  %vm202_vm10 = vcmp.eq.s32.totalorder %v794_v11, %v808_v17 }
  0x38   :  { %490 = vmatpush.msra.mxu0 %v443_v34  ;;  %v475_v9 = vadd.f32 %v411_v36, %v274_v33  ;;  %vm167_vm11 = vcmp.eq.s32.totalorder %v944_v35, %v810_v18  ;;  %vm304_vm12 = vcmp.eq.s32.totalorder %v944_v35, %v818_v23  ;;  %vm199_vm13 = vcmp.eq.s32.totalorder %v947_v8, %v810_v18 }
  0x39   :  { %v237_v37 = vsel %vm167_vm11, %v814_v20, 0.0  ;;  %v374_v38 = vsel %vm304_vm12, %v822_v25, 0.0  ;;  %v269_v10 = vsel %vm199_vm13, %v814_v20, 0.0  ;;  %vm336_vm14 = vcmp.eq.s32.totalorder %v947_v8, %v818_v23 }
  0x3a   :  { %510 = vmatpush.msra.mxu1 %v475_v9  ;;  %v438_v39 = vadd.f32 %v374_v38, %v237_v37  ;;  %v406_v40 = vsel %vm336_vm14, %v822_v25, 0.0  ;;  %v240_v41 = vsel %vm170_vm8, %v812_v19, 0.0  ;;  %v377_v42 = vsel %vm307_vm9, %v820_v24, 0.0 }
  0x3b   :  { %v470_v43 = vadd.f32 %v406_v40, %v269_v10  ;;  %v441_v44 = vadd.f32 %v377_v42, %v240_v41  ;;  %v272_v45 = vsel %vm202_vm10, %v812_v19, 0.0  ;;  %vm339_vm15 = vcmp.eq.s32.totalorder %v794_v11, %v816_v22 }
  0x3c   :  { %533 = vmatpush.msra.mxu2 %v438_v39  ;;  %v409_v46 = vsel %vm339_vm15, %v820_v24, 0.0  ;;  %v978_v47 = vadd.s32 64, %v764_v1  ;;  %v981_v48 = vadd.s32 192, %v764_v1  ;;  %vm168_vm0 = vcmp.eq.s32.totalorder %v797_v12, %v808_v17 }
  0x3d   :  { %553 = vmatpush.msra.mxu3 %v470_v43  ;;  %491 = vmatpush.msra.mxu0 %v441_v44  ;;  %v473_v49 = vadd.f32 %v409_v46, %v272_v45  ;;  %v238_v50 = vsel %vm168_vm0, %v812_v19, 0.0  ;;  %vm305_vm1 = vcmp.eq.s32.totalorder %v797_v12, %v816_v22  ;;  %vm200_vm2 = vcmp.eq.s32.totalorder %v800_v13, %v808_v17 }
  0x3e   :  { %vm165_vm3 = vcmp.eq.s32.totalorder %v978_v47, %v810_v18  ;;  %vm302_vm4 = vcmp.eq.s32.totalorder %v978_v47, %v818_v23  ;;  %vm197_vm5 = vcmp.eq.s32.totalorder %v981_v48, %v810_v18  ;;  %vm334_vm6 = vcmp.eq.s32.totalorder %v981_v48, %v818_v23 }
  0x3f   :  { %511 = vmatpush.msra.mxu1 %v473_v49  ;;  %v235_v11 = vsel %vm165_vm3, %v814_v20, 0.0  ;;  %v372_v12 = vsel %vm302_vm4, %v822_v25, 0.0  ;;  %v267_v51 = vsel %vm197_vm5, %v814_v20, 0.0  ;;  %v404_v52 = vsel %vm334_vm6, %v822_v25, 0.0 }
  0x40   :  { %v436_v53 = vadd.f32 %v372_v12, %v235_v11  ;;  %v468_v54 = vadd.f32 %v404_v52, %v267_v51  ;;  %v375_v55 = vsel %vm305_vm1, %v820_v24, 0.0  ;;  %v270_v56 = vsel %vm200_vm2, %v812_v19, 0.0 }
  0x41   :  { %v439_v57 = vadd.f32 %v375_v55, %v238_v50  ;;  %vm337_vm7 = vcmp.eq.s32.totalorder %v800_v13, %v816_v22  ;;  %v1007_v58 = vadd.s32 56, %v764_v1  ;;  %v1010_v59 = vadd.s32 184, %v764_v1 }
  0x42   :  { %534 = vmatpush.msra.mxu2 %v436_v53  ;;  %554 = vmatpush.msra.mxu3 %v468_v54  ;;  %v407_v60 = vsel %vm337_vm7, %v820_v24, 0.0  ;;  %vm166_vm8 = vcmp.eq.s32.totalorder %v944_v35, %v808_v17  ;;  %vm303_vm9 = vcmp.eq.s32.totalorder %v944_v35, %v816_v22  ;;  %vm198_vm10 = vcmp.eq.s32.totalorder %v947_v8, %v808_v17 }
  0x43   :  { %492 = vmatpush.msra.mxu0 %v439_v57  ;;  %v471_v13 = vadd.f32 %v407_v60, %v270_v56  ;;  %vm163_vm11 = vcmp.eq.s32.totalorder %v1007_v58, %v810_v18  ;;  %vm300_vm12 = vcmp.eq.s32.totalorder %v1007_v58, %v818_v23  ;;  %vm195_vm13 = vcmp.eq.s32.totalorder %v1010_v59, %v810_v18 }
  0x44   :  { %v233_v61 = vsel %vm163_vm11, %v814_v20, 0.0  ;;  %v370_v62 = vsel %vm300_vm12, %v822_v25, 0.0  ;;  %v265_v63 = vsel %vm195_vm13, %v814_v20, 0.0  ;;  %vm332_vm14 = vcmp.eq.s32.totalorder %v1010_v59, %v818_v23 }
  0x45   :  { %512 = vmatpush.msra.mxu1 %v471_v13  ;;  %v434_v0 = vadd.f32 %v370_v62, %v233_v61  ;;  %v402_v2 = vsel %vm332_vm14, %v822_v25, 0.0  ;;  %v236_v3 = vsel %vm166_vm8, %v812_v19, 0.0  ;;  %v373_v4 = vsel %vm303_vm9, %v820_v24, 0.0 }
  0x46   :  { %v466_v5 = vadd.f32 %v402_v2, %v265_v63  ;;  %v437_v14 = vadd.f32 %v373_v4, %v236_v3  ;;  %v268_v15 = vsel %vm198_vm10, %v812_v19, 0.0  ;;  %vm335_vm15 = vcmp.eq.s32.totalorder %v947_v8, %v816_v22 }
  0x47   :  { %535 = vmatpush.msra.mxu2 %v434_v0  ;;  %v405_v16 = vsel %vm335_vm15, %v820_v24, 0.0  ;;  %v1041_v6 = vadd.s32 48, %v764_v1  ;;  %v1044_v21 = vadd.s32 176, %v764_v1  ;;  %vm164_vm0 = vcmp.eq.s32.totalorder %v978_v47, %v808_v17 }
  0x48   :  { %555 = vmatpush.msra.mxu3 %v466_v5  ;;  %493 = vmatpush.msra.mxu0 %v437_v14  ;;  %v469_v26 = vadd.f32 %v405_v16, %v268_v15  ;;  %v234_v27 = vsel %vm164_vm0, %v812_v19, 0.0  ;;  %vm301_vm1 = vcmp.eq.s32.totalorder %v978_v47, %v816_v22  ;;  %vm196_vm2 = vcmp.eq.s32.totalorder %v981_v48, %v808_v17 }
  0x49   :  { %vm161_vm3 = vcmp.eq.s32.totalorder %v1041_v6, %v810_v18  ;;  %vm298_vm4 = vcmp.eq.s32.totalorder %v1041_v6, %v818_v23  ;;  %vm193_vm5 = vcmp.eq.s32.totalorder %v1044_v21, %v810_v18  ;;  %vm330_vm6 = vcmp.eq.s32.totalorder %v1044_v21, %v818_v23 }
  0x4a   :  { %513 = vmatpush.msra.mxu1 %v469_v26  ;;  %v231_v28 = vsel %vm161_vm3, %v814_v20, 0.0  ;;  %v368_v7 = vsel %vm298_vm4, %v822_v25, 0.0  ;;  %v263_v29 = vsel %vm193_vm5, %v814_v20, 0.0  ;;  %v400_v30 = vsel %vm330_vm6, %v822_v25, 0.0 }
  0x4b   :  { %v432_v31 = vadd.f32 %v368_v7, %v231_v28  ;;  %v464_v32 = vadd.f32 %v400_v30, %v263_v29  ;;  %v371_v33 = vsel %vm301_vm1, %v820_v24, 0.0  ;;  %v266_v34 = vsel %vm196_vm2, %v812_v19, 0.0 }
  0x4c   :  { %v435_v35 = vadd.f32 %v371_v33, %v234_v27  ;;  %vm333_vm7 = vcmp.eq.s32.totalorder %v981_v48, %v816_v22  ;;  %v1070_v8 = vadd.s32 40, %v764_v1  ;;  %v1073_v36 = vadd.s32 168, %v764_v1 }
  0x4d   :  { %536 = vmatpush.msra.mxu2 %v432_v31  ;;  %556 = vmatpush.msra.mxu3 %v464_v32  ;;  %v403_v9 = vsel %vm333_vm7, %v820_v24, 0.0  ;;  %vm162_vm8 = vcmp.eq.s32.totalorder %v1007_v58, %v808_v17  ;;  %vm299_vm9 = vcmp.eq.s32.totalorder %v1007_v58, %v816_v22  ;;  %vm194_vm10 = vcmp.eq.s32.totalorder %v1010_v59, %v808_v17 }
  0x4e   :  { %494 = vmatpush.msra.mxu0 %v435_v35  ;;  %v467_v37 = vadd.f32 %v403_v9, %v266_v34  ;;  %vm159_vm11 = vcmp.eq.s32.totalorder %v1070_v8, %v810_v18  ;;  %vm296_vm12 = vcmp.eq.s32.totalorder %v1070_v8, %v818_v23  ;;  %vm191_vm13 = vcmp.eq.s32.totalorder %v1073_v36, %v810_v18 }
  0x4f   :  { %v229_v38 = vsel %vm159_vm11, %v814_v20, 0.0  ;;  %v366_v10 = vsel %vm296_vm12, %v822_v25, 0.0  ;;  %v261_v39 = vsel %vm191_vm13, %v814_v20, 0.0  ;;  %vm328_vm14 = vcmp.eq.s32.totalorder %v1073_v36, %v818_v23 }
  0x50   :  { %514 = vmatpush.msra.mxu1 %v467_v37  ;;  %v430_v40 = vadd.f32 %v366_v10, %v229_v38  ;;  %v398_v41 = vsel %vm328_vm14, %v822_v25, 0.0  ;;  %v232_v42 = vsel %vm162_vm8, %v812_v19, 0.0  ;;  %v369_v43 = vsel %vm299_vm9, %v820_v24, 0.0 }
  0x51   :  { %v462_v44 = vadd.f32 %v398_v41, %v261_v39  ;;  %v433_v45 = vadd.f32 %v369_v43, %v232_v42  ;;  %v264_v46 = vsel %vm194_vm10, %v812_v19, 0.0  ;;  %vm331_vm15 = vcmp.eq.s32.totalorder %v1010_v59, %v816_v22 }
  0x52   :  { %537 = vmatpush.msra.mxu2 %v430_v40  ;;  %v401_v47 = vsel %vm331_vm15, %v820_v24, 0.0  ;;  %v1104_v48 = vadd.s32 32, %v764_v1  ;;  %v1107_v49 = vadd.s32 160, %v764_v1  ;;  %vm160_vm0 = vcmp.eq.s32.totalorder %v1041_v6, %v808_v17 }
  0x53   :  { %557 = vmatpush.msra.mxu3 %v462_v44  ;;  %495 = vmatpush.msra.mxu0 %v433_v45  ;;  %v465_v50 = vadd.f32 %v401_v47, %v264_v46  ;;  %v230_v11 = vsel %vm160_vm0, %v812_v19, 0.0  ;;  %vm297_vm1 = vcmp.eq.s32.totalorder %v1041_v6, %v816_v22  ;;  %vm192_vm2 = vcmp.eq.s32.totalorder %v1044_v21, %v808_v17 }
  0x54   :  { %vm157_vm3 = vcmp.eq.s32.totalorder %v1104_v48, %v810_v18  ;;  %vm294_vm4 = vcmp.eq.s32.totalorder %v1104_v48, %v818_v23  ;;  %vm189_vm5 = vcmp.eq.s32.totalorder %v1107_v49, %v810_v18  ;;  %vm326_vm6 = vcmp.eq.s32.totalorder %v1107_v49, %v818_v23 }
  0x55   :  { %515 = vmatpush.msra.mxu1 %v465_v50  ;;  %v227_v12 = vsel %vm157_vm3, %v814_v20, 0.0  ;;  %v364_v51 = vsel %vm294_vm4, %v822_v25, 0.0  ;;  %v259_v52 = vsel %vm189_vm5, %v814_v20, 0.0  ;;  %v396_v53 = vsel %vm326_vm6, %v822_v25, 0.0 }
  0x56   :  { %v428_v54 = vadd.f32 %v364_v51, %v227_v12  ;;  %v460_v55 = vadd.f32 %v396_v53, %v259_v52  ;;  %v367_v56 = vsel %vm297_vm1, %v820_v24, 0.0  ;;  %v262_v57 = vsel %vm192_vm2, %v812_v19, 0.0  ;;  %v485_v52 = vld [vmem:[#allocation5] sm:$0xff] }
  0x57   :  { %v431_v58 = vadd.f32 %v367_v56, %v230_v11  ;;  %vm329_vm7 = vcmp.eq.s32.totalorder %v1044_v21, %v816_v22  ;;  %v1133_v59 = vadd.s32 24, %v764_v1  ;;  %v1136_v60 = vadd.s32 152, %v764_v1 }
  0x58   :  { %538 = vmatpush.msra.mxu2 %v428_v54  ;;  %558 = vmatpush.msra.mxu3 %v460_v55  ;;  %v399_v13 = vsel %vm329_vm7, %v820_v24, 0.0  ;;  %vm158_vm8 = vcmp.eq.s32.totalorder %v1070_v8, %v808_v17  ;;  %vm295_vm9 = vcmp.eq.s32.totalorder %v1070_v8, %v816_v22  ;;  %vm190_vm10 = vcmp.eq.s32.totalorder %v1073_v36, %v808_v17 }
  0x59   :  { %496 = vmatpush.msra.mxu0 %v431_v58  ;;  %v463_v61 = vadd.f32 %v399_v13, %v262_v57  ;;  %vm155_vm11 = vcmp.eq.s32.totalorder %v1133_v59, %v810_v18  ;;  %vm292_vm12 = vcmp.eq.s32.totalorder %v1133_v59, %v818_v23  ;;  %vm187_vm13 = vcmp.eq.s32.totalorder %v1136_v60, %v810_v18  ;;  %v486_v57 = vld [vmem:[#allocation5 + $0x8] sm:$0xff] }
  0x5a   :  { %v225_v62 = vsel %vm155_vm11, %v814_v20, 0.0  ;;  %v362_v63 = vsel %vm292_vm12, %v822_v25, 0.0  ;;  %v257_v0 = vsel %vm187_vm13, %v814_v20, 0.0  ;;  %vm324_vm14 = vcmp.eq.s32.totalorder %v1136_v60, %v818_v23 }
  0x5b   :  { %516 = vmatpush.msra.mxu1 %v463_v61  ;;  %v426_v2 = vadd.f32 %v362_v63, %v225_v62  ;;  %v394_v3 = vsel %vm324_vm14, %v822_v25, 0.0  ;;  %v228_v4 = vsel %vm158_vm8, %v812_v19, 0.0  ;;  %v365_v5 = vsel %vm295_vm9, %v820_v24, 0.0 }
  0x5c   :  { %v458_v14 = vadd.f32 %v394_v3, %v257_v0  ;;  %v429_v15 = vadd.f32 %v365_v5, %v228_v4  ;;  %v260_v16 = vsel %vm190_vm10, %v812_v19, 0.0  ;;  %vm327_vm15 = vcmp.eq.s32.totalorder %v1073_v36, %v816_v22 }
  0x5d   :  { %539 = vmatpush.msra.mxu2 %v426_v2  ;;  %v397_v6 = vsel %vm327_vm15, %v820_v24, 0.0  ;;  %v1167_v21 = vadd.s32 16, %v764_v1  ;;  %v1170_v26 = vadd.s32 144, %v764_v1  ;;  %vm156_vm0 = vcmp.eq.s32.totalorder %v1104_v48, %v808_v17 }
  0x5e   :  { %559 = vmatpush.msra.mxu3 %v458_v14  ;;  %497 = vmatpush.msra.mxu0 %v429_v15  ;;  %v461_v27 = vadd.f32 %v397_v6, %v260_v16  ;;  %v226_v28 = vsel %vm156_vm0, %v812_v19, 0.0  ;;  %vm293_vm1 = vcmp.eq.s32.totalorder %v1104_v48, %v816_v22  ;;  %vm188_vm2 = vcmp.eq.s32.totalorder %v1107_v49, %v808_v17 }
  0x5f   :  { %vm153_vm3 = vcmp.eq.s32.totalorder %v1167_v21, %v810_v18  ;;  %vm290_vm4 = vcmp.eq.s32.totalorder %v1167_v21, %v818_v23  ;;  %vm185_vm5 = vcmp.eq.s32.totalorder %v1170_v26, %v810_v18  ;;  %vm322_vm6 = vcmp.eq.s32.totalorder %v1170_v26, %v818_v23 }
  0x60   :  { %517 = vmatpush.msra.mxu1 %v461_v27  ;;  %v223_v7 = vsel %vm153_vm3, %v814_v20, 0.0  ;;  %v360_v29 = vsel %vm290_vm4, %v822_v25, 0.0  ;;  %v255_v30 = vsel %vm185_vm5, %v814_v20, 0.0  ;;  %v392_v31 = vsel %vm322_vm6, %v822_v25, 0.0 }
  0x61   :  { %v424_v32 = vadd.f32 %v360_v29, %v223_v7  ;;  %v456_v33 = vadd.f32 %v392_v31, %v255_v30  ;;  %v363_v34 = vsel %vm293_vm1, %v820_v24, 0.0  ;;  %v258_v35 = vsel %vm188_vm2, %v812_v19, 0.0 }
  0x62   :  { %v427_v8 = vadd.f32 %v363_v34, %v226_v28  ;;  %vm325_vm7 = vcmp.eq.s32.totalorder %v1107_v49, %v816_v22  ;;  %v80_v36 = vadd.s32 8, %v764_v1  ;;  %v1197_v9 = vadd.s32 136, %v764_v1 }
  0x63   :  { %540 = vmatpush.msra.mxu2 %v424_v32  ;;  %560 = vmatpush.msra.mxu3 %v456_v33  ;;  %v395_v37 = vsel %vm325_vm7, %v820_v24, 0.0  ;;  %vm154_vm8 = vcmp.eq.s32.totalorder %v1133_v59, %v808_v17  ;;  %vm291_vm9 = vcmp.eq.s32.totalorder %v1133_v59, %v816_v22  ;;  %vm186_vm10 = vcmp.eq.s32.totalorder %v1136_v60, %v808_v17 }
  0x64   :  { %498 = vmatpush.msra.mxu0 %v427_v8  ;;  %v459_v38 = vadd.f32 %v395_v37, %v258_v35  ;;  %vm151_vm11 = vcmp.eq.s32.totalorder %v80_v36, %v810_v18  ;;  %vm288_vm12 = vcmp.eq.s32.totalorder %v80_v36, %v818_v23  ;;  %vm183_vm13 = vcmp.eq.s32.totalorder %v1197_v9, %v810_v18 }
  0x65   :  { %v221_v10 = vsel %vm151_vm11, %v814_v20, 0.0  ;;  %v358_v39 = vsel %vm288_vm12, %v822_v25, 0.0  ;;  %v253_v40 = vsel %vm183_vm13, %v814_v20, 0.0  ;;  %vm320_vm14 = vcmp.eq.s32.totalorder %v1197_v9, %v818_v23 }
  0x66   :  { %518 = vmatpush.msra.mxu1 %v459_v38  ;;  %v422_v41 = vadd.f32 %v358_v39, %v221_v10  ;;  %v390_v42 = vsel %vm320_vm14, %v822_v25, 0.0  ;;  %v224_v43 = vsel %vm154_vm8, %v812_v19, 0.0  ;;  %v361_v44 = vsel %vm291_vm9, %v820_v24, 0.0 }
  0x67   :  { %v454_v45 = vadd.f32 %v390_v42, %v253_v40  ;;  %v425_v46 = vadd.f32 %v361_v44, %v224_v43  ;;  %v256_v47 = vsel %vm186_vm10, %v812_v19, 0.0  ;;  %vm323_vm15 = vcmp.eq.s32.totalorder %v1136_v60, %v816_v22 }
  0x68   :  { %541 = vmatpush.msra.mxu2 %v422_v41  ;;  %v393_v48 = vsel %vm323_vm15, %v820_v24, 0.0  ;;  %vm149_vm0 = vcmp.eq.s32.totalorder %v764_v1, %v810_v18  ;;  %vm286_vm1 = vcmp.eq.s32.totalorder %v764_v1, %v818_v23  ;;  %v95_v49 = vadd.s32 128, %v764_v1 }
  0x69   :  { %561 = vmatpush.msra.mxu3 %v454_v45  ;;  %499 = vmatpush.msra.mxu0 %v425_v46  ;;  %v457_v50 = vadd.f32 %v393_v48, %v256_v47  ;;  %v219_v11 = vsel %vm149_vm0, %v814_v20, 0.0  ;;  %v356_v12 = vsel %vm286_vm1, %v822_v25, 0.0  ;;  %vm152_vm2 = vcmp.eq.s32.totalorder %v1167_v21, %v808_v17 }
  0x6a   :  { %v420_v51 = vadd.f32 %v356_v12, %v219_v11  ;;  %vm181_vm3 = vcmp.eq.s32.totalorder %v95_v49, %v810_v18  ;;  %vm318_vm4 = vcmp.eq.s32.totalorder %v95_v49, %v818_v23  ;;  %v222_v53 = vsel %vm152_vm2, %v812_v19, 0.0 }
  0x6b   :  { %519 = vmatpush.msra.mxu1 %v457_v50  ;;  %v251_v54 = vsel %vm181_vm3, %v814_v20, 0.0  ;;  %v388_v55 = vsel %vm318_vm4, %v822_v25, 0.0  ;;  %vm289_vm5 = vcmp.eq.s32.totalorder %v1167_v21, %v816_v22  ;;  %vm184_vm6 = vcmp.eq.s32.totalorder %v1170_v26, %v808_v17 }
  0x6c   :  { %542 = vmatpush.msra.mxu2 %v420_v51  ;;  %v452_v56 = vadd.f32 %v388_v55, %v251_v54  ;;  %v359_v18 = vsel %vm289_vm5, %v820_v24, 0.0  ;;  %v254_v23 = vsel %vm184_vm6, %v812_v19, 0.0  ;;  %vm321_vm7 = vcmp.eq.s32.totalorder %v1170_v26, %v816_v22 }
  0x6d   :  { %543 = vmatmul.f32.vlgmr.msra.gmra.mxu2 %v485_v52  ;;  %v423_v20 = vadd.f32 %v359_v18, %v222_v53  ;;  %v391_v25 = vsel %vm321_vm7, %v820_v24, 0.0  ;;  %vm150_vm8 = vcmp.eq.s32.totalorder %v80_v36, %v808_v17  ;;  %vm287_vm9 = vcmp.eq.s32.totalorder %v80_v36, %v816_v22 }
  0x6e   :  { %562 = vmatpush.msra.mxu3 %v452_v56  ;;  %v455_v58 = vadd.f32 %v391_v25, %v254_v23  ;;  %v220_v59 = vsel %vm150_vm8, %v812_v19, 0.0  ;;  %v357_v60 = vsel %vm287_vm9, %v820_v24, 0.0  ;;  %vm182_vm10 = vcmp.eq.s32.totalorder %v1197_v9, %v808_v17 }
  0x6f   :  { %563 = vmatmul.f32.vlgmr.msra.gmra.mxu3 %v486_v57  ;;  %500 = vmatpush.msra.mxu0 %v423_v20  ;;  %v421_v13 = vadd.f32 %v357_v60, %v220_v59  ;;  %v252_v61 = vsel %vm182_vm10, %v812_v19, 0.0  ;;  %vm319_vm11 = vcmp.eq.s32.totalorder %v1197_v9, %v816_v22  ;;  %vm148_vm12 = vcmp.eq.s32.totalorder %v764_v1, %v808_v17 }
  0x70   :  { %520 = vmatpush.msra.mxu1 %v455_v58  ;;  %v389_v62 = vsel %vm319_vm11, %v820_v24, 0.0  ;;  %v218_v63 = vsel %vm148_vm12, %v812_v19, 0.0  ;;  %vm285_vm13 = vcmp.eq.s32.totalorder %v764_v1, %v816_v22  ;;  %vm180_vm14 = vcmp.eq.s32.totalorder %v95_v49, %v808_v17 }
  0x71   :  { %501 = vmatpush.msra.mxu0 %v421_v13  ;;  %v453_v0 = vadd.f32 %v389_v62, %v252_v61  ;;  %v355_v2 = vsel %vm285_vm13, %v820_v24, 0.0  ;;  %v250_v3 = vsel %vm180_vm14, %v812_v19, 0.0  ;;  %vm317_vm15 = vcmp.eq.s32.totalorder %v95_v49, %v816_v22 }
  0x72   :  { %v419_v4 = vadd.f32 %v355_v2, %v218_v63  ;;  %v387_v5 = vsel %vm317_vm15, %v820_v24, 0.0 }
  0x73   :  { %521 = vmatpush.msra.mxu1 %v453_v0  ;;  %v451_v14 = vadd.f32 %v387_v5, %v250_v3 }
  0x74   :  { %502 = vmatpush.msra.mxu0 %v419_v4 }
  0x75   :  { %522 = vmatpush.msra.mxu1 %v451_v14  ;;  %503 = vmatmul.f32.vlgmr.msra.gmra.mxu0 %v485_v52 }
  0x76   :  { %523 = vmatmul.f32.vlgmr.msra.gmra.mxu1 %v486_v57 }
  0xf0   :  { %v544_v1 = vpop.f32.mrf.mxu2 }
  0xf2   :  { %v504_v17 = vpop.f32.mrf.mxu0  ;;  %v564_v19 = vpop.f32.mrf.mxu3 }
  0xf3   :  { %v524_v15 = vpop.f32.mrf.mxu1  ;;  %v565_v22 = vadd.f32 %v564_v19, %v544_v1 }
  0xf4   :  { %v525_v16 = vadd.f32 %v524_v15, %v504_v17 }
  0xf5   :  { %577 = vst [vmem:[#allocation11 + $0x8] sm:$0xff] %v565_v22 }
  0xf6   :  { %576 = vst [vmem:[#allocation11] sm:$0xff] %v525_v16 }
  0xf7   :  { %588 = dma.vmem_to_hbm [thread:$0]  %s584_s4, 256, %s586_s25, [#allocation7]  }
  0xf8   :  { %705 = dma.done.wait [#allocation7], 256  }
  0xf9   :  { %706 = vsyncadd [#allocation7], 4294967040 }
  0xfa   :  { %593 = vsyncpa [#allocation6], 1 }
  0xfb   :  { %594 = vsyncpa [#allocation9], 1 }
  0xfc   :  { %595 = vsyncpa [#allocation7], 1 }

</bundles_post_ra>
